<compile_context>
chip_gen: v5e
topology: v5e:2x2
jax: 0.10.0
libtpu: 0.0.40
codegen_flags: <defaults>
</compile_context>

<pallas_src>
import functools

import numpy as np
import jax
import jax.numpy as jnp
from jax.experimental import pallas as pl
from jax.experimental.pallas import tpu as pltpu


# ----------------------------------------------------------------------------
# Kernel. Grid = (batch, Ho-tile). Args:
#   w_ref:  [Cin, Cout]   (SMEM)      b_ref:  [Cout]        (SMEM)
#   x_ref:  [1, Cin, H, W]            ah_ref: [THo, H]      (row-interp tile)
#   awt_ref:[W, Wo_pad]               o_ref:  [1, THo, Wo_pad] (int8/int32)
#   cstack_ref: VMEM scratch [H, Cout*Wo_pad]  (persists across Ho tiles)
# ----------------------------------------------------------------------------
def fused_conv_upsample_argmax_kernel(w_ref, b_ref, x_ref, ah_ref, awt_ref,
                                      o_ref, cstack_ref):
    cin, cout = w_ref.shape
    wo_pad = awt_ref.shape[1]
    t = pl.program_id(1)

    # ---- once per image (t == 0): 1x1 conv (VPU) + column interp (MXU) -----
    # Cached class-major along the lane axis so each class slab is a free,
    # lane-aligned slice later:
    #   cstack[:, c*Wo_pad:(c+1)*Wo_pad] = (sum_k x_k * w[k,c] + b[c]) @ Aw^T
    @pl.when(t == 0)
    def _():
        awt = awt_ref[...]                                    # [W, Wo_pad]
        for c in range(cout):                                 # small static unroll
            acc = x_ref[0, 0] * w_ref[0, c]
            for k in range(1, cin):
                acc = acc + x_ref[0, k] * w_ref[k, c]
            logit_c = (acc + b_ref[c]).astype(awt.dtype)      # [H, W]
            col_c = jnp.dot(logit_c, awt,
                            preferred_element_type=jnp.float32)   # [H, Wo_pad]
            cstack_ref[:, c * wo_pad:(c + 1) * wo_pad] = col_c.astype(
                cstack_ref.dtype)

    # ---- every Ho tile: row interp for ALL classes in ONE wide MXU matmul --
    up = jnp.dot(ah_ref[...], cstack_ref[...],
                 preferred_element_type=jnp.float32)          # [THo, Cout*Wo_pad]

    # Running argmax over lane-aligned class slabs (strict '>' => first-max
    # tie-break, matching torch.argmax).
    best_val = up[:, 0:wo_pad]
    best_idx = jnp.zeros(best_val.shape, jnp.int32)
    for c in range(1, cout):
        slab = up[:, c * wo_pad:(c + 1) * wo_pad]
        take = slab > best_val
        best_val = jnp.where(take, slab, best_val)
        best_idx = jnp.where(take, jnp.int32(c), best_idx)

    o_ref[0] = best_idx.astype(o_ref.dtype)


# ----------------------------------------------------------------------------
# Host-side helpers (numpy; baked in as constants per static shape).
# ----------------------------------------------------------------------------
def _round_up(x, m):
    return (x + m - 1) // m * m


def _interp_matrix_np(in_size, out_size, pad_out=None):
    """PyTorch-style bilinear interpolation matrix, align_corners=False.
    Optional zero-padded extra output rows (padding rows produce 0 and are
    sliced off outside the kernel)."""
    scale = in_size / out_size
    dst = np.arange(out_size, dtype=np.float64)
    src = np.maximum((dst + 0.5) * scale - 0.5, 0.0)
    i0 = np.minimum(np.floor(src).astype(np.int64), in_size - 1)
    i1 = np.minimum(i0 + 1, in_size - 1)
    lam = np.clip(src - i0, 0.0, 1.0)
    pad_out = out_size if pad_out is None else pad_out
    a = np.zeros((pad_out, in_size), dtype=np.float32)
    rows = np.arange(out_size)
    a[rows, i0] += (1.0 - lam).astype(np.float32)
    a[rows, i1] += lam.astype(np.float32)
    return a  # [pad_out, in_size]


def _vmem_bytes_estimate(tho, h, w, cin, cout, wo_pad, mm_bytes, out_bytes):
    cstack = h * cout * wo_pad * mm_bytes          # persistent scratch
    up = tho * cout * wo_pad * 4                   # wide matmul product (f32)
    argmax = 2 * tho * wo_pad * 4                  # best_val + best_idx
    ah_in = 2 * tho * h * mm_bytes                 # double-buffered input
    x_in = 2 * cin * h * w * 4
    awt_in = 2 * w * wo_pad * mm_bytes
    out = 2 * tho * wo_pad * out_bytes
    return cstack + up + argmax + ah_in + x_in + awt_in + out


def _choose_ho_tile(ho, h, w, cin, cout, wo_pad, mm_bytes, out_bytes,
                    budget_bytes=36 * 1024 * 1024):
    """Largest THo (multiple of 32, sublane-aligned even for the int8 output)
    whose per-tile VMEM footprint fits a budget small enough for v7x's
    64 MiB/TC. Ho is zero-padded to a multiple of THo, so odd Ho never falls
    back to a giant full-Ho tile."""
    ho_cap = _round_up(ho, 32)
    for tho in (512, 256, 128, 64, 32):
        if tho > ho_cap:
            continue
        if _vmem_bytes_estimate(tho, h, w, cin, cout, wo_pad, mm_bytes,
                                out_bytes) <= budget_bytes:
            return tho
    return 32
    # TODO(synk): for very large Cout*Wo on v7x, additionally single-buffer the
    # index-constant inputs (pipeline_mode=pl.Buffered(1) on x / Aw^T).


# ----------------------------------------------------------------------------
# onnx_net forward: backbone(1x1 conv) -> bilinear upsample -> argmax(dim=1)
# ----------------------------------------------------------------------------
@functools.partial(jax.jit, static_argnames=("size", "matmul_dtype"))
def onnx_net_forward(x, conv_w, conv_b, size, matmul_dtype=jnp.float32):
    n, cin, h, w = x.shape
    cout = conv_w.shape[1]
    ho, wo = size

    mm_bytes = np.dtype(matmul_dtype).itemsize
    out_dtype = jnp.int8 if cout <= 127 else jnp.int32   # narrow class-id writeback
    out_bytes = np.dtype(out_dtype).itemsize

    wo_pad = _round_up(wo, 128)                           # lane-dense store / slabs
    tho = _choose_ho_tile(ho, h, w, cin, cout, wo_pad, mm_bytes, out_bytes)
    ho_pad = _round_up(ho, tho)
    n_ho_tiles = ho_pad // tho

    # Static interpolation matrices (numpy -> constants). Zero rows/cols pad
    # Ho/Wo so every tile and every store is full-size and lane-aligned.
    ah = jnp.asarray(_interp_matrix_np(h, ho, pad_out=ho_pad), matmul_dtype)     # [Ho_pad, H]
    awt = jnp.asarray(_interp_matrix_np(w, wo, pad_out=wo_pad).T, matmul_dtype)  # [W, Wo_pad]

    flops = (n * (2 * cin * cout * h * w                      # 1x1 conv (once/image)
                  + 2 * cout * h * w * wo_pad)                # column interp (once/image)
             + n * n_ho_tiles * (2 * tho * h * cout * wo_pad  # wide row interp
                                 + 3 * cout * tho * wo_pad))  # running argmax
    bytes_accessed = (n * cin * h * w * 4                     # x: once per image
                      + conv_w.size * 4 + conv_b.size * 4
                      + w * wo_pad * mm_bytes                 # Aw^T: DMA'd once
                      + n * n_ho_tiles * tho * h * mm_bytes   # Ah: per (image, tile)
                      + n * ho_pad * wo_pad * out_bytes)      # class-map writeback

    vmem_limit = min(64 * 1024 * 1024,
                     max(32 * 1024 * 1024,
                         int(1.5 * _vmem_bytes_estimate(
                             tho, h, w, cin, cout, wo_pad, mm_bytes, out_bytes))))

    y_pad = pl.pallas_call(
        fused_conv_upsample_argmax_kernel,
        out_shape=jax.ShapeDtypeStruct((n, ho_pad, wo_pad), out_dtype),
        grid=(n, n_ho_tiles),
        in_specs=[
            pl.BlockSpec(memory_space=pltpu.MemorySpace.SMEM),        # conv_w [Cin, Cout]
            pl.BlockSpec(memory_space=pltpu.MemorySpace.SMEM),        # conv_b [Cout]
            pl.BlockSpec((1, cin, h, w), lambda b, t: (b, 0, 0, 0)),  # x (constant over t)
            pl.BlockSpec((tho, h), lambda b, t: (t, 0)),              # Ah tile
            pl.BlockSpec((w, wo_pad), lambda b, t: (0, 0)),           # Aw^T (resident)
        ],
        out_specs=pl.BlockSpec((1, tho, wo_pad), lambda b, t: (b, t, 0)),
        scratch_shapes=[pltpu.VMEM((h, cout * wo_pad), matmul_dtype)],
        compiler_params=pltpu.CompilerParams(
            # batch axis sharded across TCs (v7x megacore); the Ho-tile axis must
            # be "arbitrary" because the cached cstack scratch is reused across it.
            dimension_semantics=("parallel", "arbitrary"),
            vmem_limit_bytes=vmem_limit,
        ),
        cost_estimate=pl.CostEstimate(
            flops=flops, transcendentals=0, bytes_accessed=bytes_accessed),
    )(conv_w, conv_b, x, ah, awt)

    # Strip the Ho/Wo padding and widen the class ids.
    # TODO(synk): torch.argmax returns int64; int32 is returned here (cast outside
    # if exact dtype parity is required).
    return y_pad[:, :ho, :wo].astype(jnp.int32)


# ----------------------------------------------------------------------------
# Pure-numpy reference (same math as the PyTorch module) for a soft check.
# ----------------------------------------------------------------------------
def _reference_np(x, conv_w, conv_b, size):
    x = np.asarray(x, np.float64)
    wmat = np.asarray(conv_w, np.float64)
    bias = np.asarray(conv_b, np.float64)
    _, _, h, w = x.shape
    ho, wo = size
    ah = _interp_matrix_np(h, ho).astype(np.float64)   # [Ho, H]
    aw = _interp_matrix_np(w, wo).astype(np.float64)   # [Wo, W]
    logits = np.einsum("nkhw,kc->nchw", x, wmat) + bias[None, :, None, None]
    rows = np.einsum("oH,ncHW->ncoW", ah, logits)
    full = np.einsum("pW,ncoW->ncop", aw, rows)
    return np.argmax(full, axis=1)


if __name__ == "__main__":
    # Small shapes consistent with the module: NCHW input, upsample to `size`.
    # SIZE deliberately not a multiple of the tile/lane sizes: exercises the
    # per-image cstack caching across 2 Ho tiles and the zero-padded Ho/Wo path.
    N, CIN, H, W = 2, 4, 16, 16
    NUM_CLASSES = 5
    SIZE = (80, 40)

    key = jax.random.PRNGKey(0)
    kx, kw, kb = jax.random.split(key, 3)
    x = jax.random.normal(kx, (N, CIN, H, W), dtype=jnp.float32)
    conv_w = 0.1 * jax.random.normal(kw, (CIN, NUM_CLASSES), dtype=jnp.float32)
    conv_b = 0.05 * jax.random.normal(kb, (NUM_CLASSES,), dtype=jnp.float32)

    # fp32 matmul path: exact argmax parity with the PyTorch fp32 reference.
    y = jax.block_until_ready(onnx_net_forward(x, conv_w, conv_b, SIZE))
    assert y.shape == (N,) + SIZE
    assert y.dtype == jnp.int32

    ref = _reference_np(np.asarray(x), np.asarray(conv_w), np.asarray(conv_b), SIZE)
    mismatch = float(np.mean(np.asarray(y) != ref))
    assert mismatch < 0.01, f"argmax mismatch fraction {mismatch}"

    # bf16 MXU fast path (v6e/v7x); argmax may differ only at bf16 near-ties.
    y_bf16 = jax.block_until_ready(
        onnx_net_forward(x, conv_w, conv_b, SIZE, matmul_dtype=jnp.bfloat16))
    assert y_bf16.shape == (N,) + SIZE

    print("KERNEL_OK")
</pallas_src>

<mosaic_0001>
module attributes {stable_mosaic.version = 11 : i64} {
  func.func @fused_conv_upsample_argmax_kernel(%arg0: i32, %arg1: i32, %arg2: memref<4x5xf32, #tpu.memory_space<smem>>, %arg3: memref<5xf32, #tpu.memory_space<smem>>, %arg4: memref<1x4x16x16xf32, #tpu.memory_space<vmem>>, %arg5: memref<64x16xf32, #tpu.memory_space<vmem>>, %arg6: memref<16x128xf32, #tpu.memory_space<vmem>>, %arg7: memref<1x64x128xi8, #tpu.memory_space<vmem>>, %arg8: memref<16x640xf32, #tpu.memory_space<vmem>>) attributes {dimension_semantics = [#tpu.dimension_semantics<parallel>, #tpu.dimension_semantics<arbitrary>], iteration_bounds = array<i64: 2, 2>, scalar_prefetch = 0 : i64, scratch_operands = 1 : i64, tpu.core_type = #tpu.core_type<tc>, window_params = [{transform_indices = @transform_0, window_bounds = array<i64: 4, 5>}, {transform_indices = @transform_1, window_bounds = array<i64: 5>}, {transform_indices = @transform_2, window_bounds = array<i64: 1, 4, 16, 16>}, {transform_indices = @transform_3, window_bounds = array<i64: 64, 16>}, {pipeline_mode = #tpu.pipeline_mode<synchronous>, transform_indices = @transform_4, window_bounds = array<i64: 16, 128>}, {transform_indices = @transform_5, window_bounds = array<i64: 1, 64, 128>}]} {
    %c0_i32 = arith.constant 0 : i32
    %0 = arith.cmpi eq, %arg1, %c0_i32 : i32
    %1 = arith.extui %0 : i1 to i32
    %c0_i32_0 = arith.constant 0 : i32
    %2 = arith.cmpi ne, %1, %c0_i32_0 : i32
    scf.if %2 {
      %c0_8 = arith.constant 0 : index
      %c0_9 = arith.constant 0 : index
      %31 = vector.load %arg6[%c0_8, %c0_9] : memref<16x128xf32, #tpu.memory_space<vmem>>, vector<16x128xf32>
      %c0_10 = arith.constant 0 : index
      %c0_11 = arith.constant 0 : index
      %c0_12 = arith.constant 0 : index
      %c0_13 = arith.constant 0 : index
      %32 = vector.load %arg4[%c0_10, %c0_11, %c0_12, %c0_13] : memref<1x4x16x16xf32, #tpu.memory_space<vmem>>, vector<1x1x16x16xf32>
      %33 = vector.shape_cast %32 : vector<1x1x16x16xf32> to vector<16x16xf32>
      %c0_14 = arith.constant 0 : index
      %c0_15 = arith.constant 0 : index
      %34 = memref.load %arg2[%c0_14, %c0_15] : memref<4x5xf32, #tpu.memory_space<smem>>
      %35 = vector.broadcast %34 : f32 to vector<16x16xf32>
      %36 = arith.mulf %33, %35 : vector<16x16xf32>
      %c0_16 = arith.constant 0 : index
      %c1 = arith.constant 1 : index
      %c0_17 = arith.constant 0 : index
      %c0_18 = arith.constant 0 : index
      %37 = vector.load %arg4[%c0_16, %c1, %c0_17, %c0_18] : memref<1x4x16x16xf32, #tpu.memory_space<vmem>>, vector<1x1x16x16xf32>
      %38 = vector.shape_cast %37 : vector<1x1x16x16xf32> to vector<16x16xf32>
      %c1_19 = arith.constant 1 : index
      %c0_20 = arith.constant 0 : index
      %39 = memref.load %arg2[%c1_19, %c0_20] : memref<4x5xf32, #tpu.memory_space<smem>>
      %40 = vector.broadcast %39 : f32 to vector<16x16xf32>
      %41 = arith.mulf %38, %40 : vector<16x16xf32>
      %42 = arith.addf %36, %41 : vector<16x16xf32>
      %c0_21 = arith.constant 0 : index
      %c2 = arith.constant 2 : index
      %c0_22 = arith.constant 0 : index
      %c0_23 = arith.constant 0 : index
      %43 = vector.load %arg4[%c0_21, %c2, %c0_22, %c0_23] : memref<1x4x16x16xf32, #tpu.memory_space<vmem>>, vector<1x1x16x16xf32>
      %44 = vector.shape_cast %43 : vector<1x1x16x16xf32> to vector<16x16xf32>
      %c2_24 = arith.constant 2 : index
      %c0_25 = arith.constant 0 : index
      %45 = memref.load %arg2[%c2_24, %c0_25] : memref<4x5xf32, #tpu.memory_space<smem>>
      %46 = vector.broadcast %45 : f32 to vector<16x16xf32>
      %47 = arith.mulf %44, %46 : vector<16x16xf32>
      %48 = arith.addf %42, %47 : vector<16x16xf32>
      %c0_26 = arith.constant 0 : index
      %c3 = arith.constant 3 : index
      %c0_27 = arith.constant 0 : index
      %c0_28 = arith.constant 0 : index
      %49 = vector.load %arg4[%c0_26, %c3, %c0_27, %c0_28] : memref<1x4x16x16xf32, #tpu.memory_space<vmem>>, vector<1x1x16x16xf32>
      %50 = vector.shape_cast %49 : vector<1x1x16x16xf32> to vector<16x16xf32>
      %c3_29 = arith.constant 3 : index
      %c0_30 = arith.constant 0 : index
      %51 = memref.load %arg2[%c3_29, %c0_30] : memref<4x5xf32, #tpu.memory_space<smem>>
      %52 = vector.broadcast %51 : f32 to vector<16x16xf32>
      %53 = arith.mulf %50, %52 : vector<16x16xf32>
      %54 = arith.addf %48, %53 : vector<16x16xf32>
      %c0_31 = arith.constant 0 : index
      %55 = memref.load %arg3[%c0_31] : memref<5xf32, #tpu.memory_space<smem>>
      %56 = vector.broadcast %55 : f32 to vector<16x16xf32>
      %57 = arith.addf %54, %56 : vector<16x16xf32>
      %cst_32 = arith.constant dense<0.000000e+00> : vector<16x128xf32>
      %58 = tpu.matmul %57, %31, %cst_32 {dimension_numbers = #tpu.dot_dimension_numbers<[1], [0], [0], [1], [0, 0, 1, 1], [], []>} : vector<16x16xf32>, vector<16x128xf32>, vector<16x128xf32> -> vector<16x128xf32>
      %c0_33 = arith.constant 0 : index
      %c0_34 = arith.constant 0 : index
      %59 = vector.load %arg8[%c0_33, %c0_34] : memref<16x640xf32, #tpu.memory_space<vmem>>, vector<16x128xf32>
      tpu.vector_store %arg8[%c0_33, %c0_34], %58 {strides = array<i32>} : memref<16x640xf32, #tpu.memory_space<vmem>>, vector<16x128xf32>,
      %c0_35 = arith.constant 0 : index
      %c0_36 = arith.constant 0 : index
      %c0_37 = arith.constant 0 : index
      %c0_38 = arith.constant 0 : index
      %60 = vector.load %arg4[%c0_35, %c0_36, %c0_37, %c0_38] : memref<1x4x16x16xf32, #tpu.memory_space<vmem>>, vector<1x1x16x16xf32>
      %61 = vector.shape_cast %60 : vector<1x1x16x16xf32> to vector<16x16xf32>
      %c0_39 = arith.constant 0 : index
      %c1_40 = arith.constant 1 : index
      %62 = memref.load %arg2[%c0_39, %c1_40] : memref<4x5xf32, #tpu.memory_space<smem>>
      %63 = vector.broadcast %62 : f32 to vector<16x16xf32>
      %64 = arith.mulf %61, %63 : vector<16x16xf32>
      %c0_41 = arith.constant 0 : index
      %c1_42 = arith.constant 1 : index
      %c0_43 = arith.constant 0 : index
      %c0_44 = arith.constant 0 : index
      %65 = vector.load %arg4[%c0_41, %c1_42, %c0_43, %c0_44] : memref<1x4x16x16xf32, #tpu.memory_space<vmem>>, vector<1x1x16x16xf32>
      %66 = vector.shape_cast %65 : vector<1x1x16x16xf32> to vector<16x16xf32>
      %c1_45 = arith.constant 1 : index
      %c1_46 = arith.constant 1 : index
      %67 = memref.load %arg2[%c1_45, %c1_46] : memref<4x5xf32, #tpu.memory_space<smem>>
      %68 = vector.broadcast %67 : f32 to vector<16x16xf32>
      %69 = arith.mulf %66, %68 : vector<16x16xf32>
      %70 = arith.addf %64, %69 : vector<16x16xf32>
      %c0_47 = arith.constant 0 : index
      %c2_48 = arith.constant 2 : index
      %c0_49 = arith.constant 0 : index
      %c0_50 = arith.constant 0 : index
      %71 = vector.load %arg4[%c0_47, %c2_48, %c0_49, %c0_50] : memref<1x4x16x16xf32, #tpu.memory_space<vmem>>, vector<1x1x16x16xf32>
      %72 = vector.shape_cast %71 : vector<1x1x16x16xf32> to vector<16x16xf32>
      %c2_51 = arith.constant 2 : index
      %c1_52 = arith.constant 1 : index
      %73 = memref.load %arg2[%c2_51, %c1_52] : memref<4x5xf32, #tpu.memory_space<smem>>
      %74 = vector.broadcast %73 : f32 to vector<16x16xf32>
      %75 = arith.mulf %72, %74 : vector<16x16xf32>
      %76 = arith.addf %70, %75 : vector<16x16xf32>
      %c0_53 = arith.constant 0 : index
      %c3_54 = arith.constant 3 : index
      %c0_55 = arith.constant 0 : index
      %c0_56 = arith.constant 0 : index
      %77 = vector.load %arg4[%c0_53, %c3_54, %c0_55, %c0_56] : memref<1x4x16x16xf32, #tpu.memory_space<vmem>>, vector<1x1x16x16xf32>
      %78 = vector.shape_cast %77 : vector<1x1x16x16xf32> to vector<16x16xf32>
      %c3_57 = arith.constant 3 : index
      %c1_58 = arith.constant 1 : index
      %79 = memref.load %arg2[%c3_57, %c1_58] : memref<4x5xf32, #tpu.memory_space<smem>>
      %80 = vector.broadcast %79 : f32 to vector<16x16xf32>
      %81 = arith.mulf %78, %80 : vector<16x16xf32>
      %82 = arith.addf %76, %81 : vector<16x16xf32>
      %c1_59 = arith.constant 1 : index
      %83 = memref.load %arg3[%c1_59] : memref<5xf32, #tpu.memory_space<smem>>
      %84 = vector.broadcast %83 : f32 to vector<16x16xf32>
      %85 = arith.addf %82, %84 : vector<16x16xf32>
      %cst_60 = arith.constant dense<0.000000e+00> : vector<16x128xf32>
      %86 = tpu.matmul %85, %31, %cst_60 {dimension_numbers = #tpu.dot_dimension_numbers<[1], [0], [0], [1], [0, 0, 1, 1], [], []>} : vector<16x16xf32>, vector<16x128xf32>, vector<16x128xf32> -> vector<16x128xf32>
      %c0_61 = arith.constant 0 : index
      %c128 = arith.constant 128 : index
      %87 = vector.load %arg8[%c0_61, %c128] : memref<16x640xf32, #tpu.memory_space<vmem>>, vector<16x128xf32>
      tpu.vector_store %arg8[%c0_61, %c128], %86 {strides = array<i32>} : memref<16x640xf32, #tpu.memory_space<vmem>>, vector<16x128xf32>,
      %c0_62 = arith.constant 0 : index
      %c0_63 = arith.constant 0 : index
      %c0_64 = arith.constant 0 : index
      %c0_65 = arith.constant 0 : index
      %88 = vector.load %arg4[%c0_62, %c0_63, %c0_64, %c0_65] : memref<1x4x16x16xf32, #tpu.memory_space<vmem>>, vector<1x1x16x16xf32>
      %89 = vector.shape_cast %88 : vector<1x1x16x16xf32> to vector<16x16xf32>
      %c0_66 = arith.constant 0 : index
      %c2_67 = arith.constant 2 : index
      %90 = memref.load %arg2[%c0_66, %c2_67] : memref<4x5xf32, #tpu.memory_space<smem>>
      %91 = vector.broadcast %90 : f32 to vector<16x16xf32>
      %92 = arith.mulf %89, %91 : vector<16x16xf32>
      %c0_68 = arith.constant 0 : index
      %c1_69 = arith.constant 1 : index
      %c0_70 = arith.constant 0 : index
      %c0_71 = arith.constant 0 : index
      %93 = vector.load %arg4[%c0_68, %c1_69, %c0_70, %c0_71] : memref<1x4x16x16xf32, #tpu.memory_space<vmem>>, vector<1x1x16x16xf32>
      %94 = vector.shape_cast %93 : vector<1x1x16x16xf32> to vector<16x16xf32>
      %c1_72 = arith.constant 1 : index
      %c2_73 = arith.constant 2 : index
      %95 = memref.load %arg2[%c1_72, %c2_73] : memref<4x5xf32, #tpu.memory_space<smem>>
      %96 = vector.broadcast %95 : f32 to vector<16x16xf32>
      %97 = arith.mulf %94, %96 : vector<16x16xf32>
      %98 = arith.addf %92, %97 : vector<16x16xf32>
      %c0_74 = arith.constant 0 : index
      %c2_75 = arith.constant 2 : index
      %c0_76 = arith.constant 0 : index
      %c0_77 = arith.constant 0 : index
      %99 = vector.load %arg4[%c0_74, %c2_75, %c0_76, %c0_77] : memref<1x4x16x16xf32, #tpu.memory_space<vmem>>, vector<1x1x16x16xf32>
      %100 = vector.shape_cast %99 : vector<1x1x16x16xf32> to vector<16x16xf32>
      %c2_78 = arith.constant 2 : index
      %c2_79 = arith.constant 2 : index
      %101 = memref.load %arg2[%c2_78, %c2_79] : memref<4x5xf32, #tpu.memory_space<smem>>
      %102 = vector.broadcast %101 : f32 to vector<16x16xf32>
      %103 = arith.mulf %100, %102 : vector<16x16xf32>
      %104 = arith.addf %98, %103 : vector<16x16xf32>
      %c0_80 = arith.constant 0 : index
      %c3_81 = arith.constant 3 : index
      %c0_82 = arith.constant 0 : index
      %c0_83 = arith.constant 0 : index
      %105 = vector.load %arg4[%c0_80, %c3_81, %c0_82, %c0_83] : memref<1x4x16x16xf32, #tpu.memory_space<vmem>>, vector<1x1x16x16xf32>
      %106 = vector.shape_cast %105 : vector<1x1x16x16xf32> to vector<16x16xf32>
      %c3_84 = arith.constant 3 : index
      %c2_85 = arith.constant 2 : index
      %107 = memref.load %arg2[%c3_84, %c2_85] : memref<4x5xf32, #tpu.memory_space<smem>>
      %108 = vector.broadcast %107 : f32 to vector<16x16xf32>
      %109 = arith.mulf %106, %108 : vector<16x16xf32>
      %110 = arith.addf %104, %109 : vector<16x16xf32>
      %c2_86 = arith.constant 2 : index
      %111 = memref.load %arg3[%c2_86] : memref<5xf32, #tpu.memory_space<smem>>
      %112 = vector.broadcast %111 : f32 to vector<16x16xf32>
      %113 = arith.addf %110, %112 : vector<16x16xf32>
      %cst_87 = arith.constant dense<0.000000e+00> : vector<16x128xf32>
      %114 = tpu.matmul %113, %31, %cst_87 {dimension_numbers = #tpu.dot_dimension_numbers<[1], [0], [0], [1], [0, 0, 1, 1], [], []>} : vector<16x16xf32>, vector<16x128xf32>, vector<16x128xf32> -> vector<16x128xf32>
      %c0_88 = arith.constant 0 : index
      %c256 = arith.constant 256 : index
      %115 = vector.load %arg8[%c0_88, %c256] : memref<16x640xf32, #tpu.memory_space<vmem>>, vector<16x128xf32>
      tpu.vector_store %arg8[%c0_88, %c256], %114 {strides = array<i32>} : memref<16x640xf32, #tpu.memory_space<vmem>>, vector<16x128xf32>,
      %c0_89 = arith.constant 0 : index
      %c0_90 = arith.constant 0 : index
      %c0_91 = arith.constant 0 : index
      %c0_92 = arith.constant 0 : index
      %116 = vector.load %arg4[%c0_89, %c0_90, %c0_91, %c0_92] : memref<1x4x16x16xf32, #tpu.memory_space<vmem>>, vector<1x1x16x16xf32>
      %117 = vector.shape_cast %116 : vector<1x1x16x16xf32> to vector<16x16xf32>
      %c0_93 = arith.constant 0 : index
      %c3_94 = arith.constant 3 : index
      %118 = memref.load %arg2[%c0_93, %c3_94] : memref<4x5xf32, #tpu.memory_space<smem>>
      %119 = vector.broadcast %118 : f32 to vector<16x16xf32>
      %120 = arith.mulf %117, %119 : vector<16x16xf32>
      %c0_95 = arith.constant 0 : index
      %c1_96 = arith.constant 1 : index
      %c0_97 = arith.constant 0 : index
      %c0_98 = arith.constant 0 : index
      %121 = vector.load %arg4[%c0_95, %c1_96, %c0_97, %c0_98] : memref<1x4x16x16xf32, #tpu.memory_space<vmem>>, vector<1x1x16x16xf32>
      %122 = vector.shape_cast %121 : vector<1x1x16x16xf32> to vector<16x16xf32>
      %c1_99 = arith.constant 1 : index
      %c3_100 = arith.constant 3 : index
      %123 = memref.load %arg2[%c1_99, %c3_100] : memref<4x5xf32, #tpu.memory_space<smem>>
      %124 = vector.broadcast %123 : f32 to vector<16x16xf32>
      %125 = arith.mulf %122, %124 : vector<16x16xf32>
      %126 = arith.addf %120, %125 : vector<16x16xf32>
      %c0_101 = arith.constant 0 : index
      %c2_102 = arith.constant 2 : index
      %c0_103 = arith.constant 0 : index
      %c0_104 = arith.constant 0 : index
      %127 = vector.load %arg4[%c0_101, %c2_102, %c0_103, %c0_104] : memref<1x4x16x16xf32, #tpu.memory_space<vmem>>, vector<1x1x16x16xf32>
      %128 = vector.shape_cast %127 : vector<1x1x16x16xf32> to vector<16x16xf32>
      %c2_105 = arith.constant 2 : index
      %c3_106 = arith.constant 3 : index
      %129 = memref.load %arg2[%c2_105, %c3_106] : memref<4x5xf32, #tpu.memory_space<smem>>
      %130 = vector.broadcast %129 : f32 to vector<16x16xf32>
      %131 = arith.mulf %128, %130 : vector<16x16xf32>
      %132 = arith.addf %126, %131 : vector<16x16xf32>
      %c0_107 = arith.constant 0 : index
      %c3_108 = arith.constant 3 : index
      %c0_109 = arith.constant 0 : index
      %c0_110 = arith.constant 0 : index
      %133 = vector.load %arg4[%c0_107, %c3_108, %c0_109, %c0_110] : memref<1x4x16x16xf32, #tpu.memory_space<vmem>>, vector<1x1x16x16xf32>
      %134 = vector.shape_cast %133 : vector<1x1x16x16xf32> to vector<16x16xf32>
      %c3_111 = arith.constant 3 : index
      %c3_112 = arith.constant 3 : index
      %135 = memref.load %arg2[%c3_111, %c3_112] : memref<4x5xf32, #tpu.memory_space<smem>>
      %136 = vector.broadcast %135 : f32 to vector<16x16xf32>
      %137 = arith.mulf %134, %136 : vector<16x16xf32>
      %138 = arith.addf %132, %137 : vector<16x16xf32>
      %c3_113 = arith.constant 3 : index
      %139 = memref.load %arg3[%c3_113] : memref<5xf32, #tpu.memory_space<smem>>
      %140 = vector.broadcast %139 : f32 to vector<16x16xf32>
      %141 = arith.addf %138, %140 : vector<16x16xf32>
      %cst_114 = arith.constant dense<0.000000e+00> : vector<16x128xf32>
      %142 = tpu.matmul %141, %31, %cst_114 {dimension_numbers = #tpu.dot_dimension_numbers<[1], [0], [0], [1], [0, 0, 1, 1], [], []>} : vector<16x16xf32>, vector<16x128xf32>, vector<16x128xf32> -> vector<16x128xf32>
      %c0_115 = arith.constant 0 : index
      %c384 = arith.constant 384 : index
      %143 = vector.load %arg8[%c0_115, %c384] : memref<16x640xf32, #tpu.memory_space<vmem>>, vector<16x128xf32>
      tpu.vector_store %arg8[%c0_115, %c384], %142 {strides = array<i32>} : memref<16x640xf32, #tpu.memory_space<vmem>>, vector<16x128xf32>,
      %c0_116 = arith.constant 0 : index
      %c0_117 = arith.constant 0 : index
      %c0_118 = arith.constant 0 : index
      %c0_119 = arith.constant 0 : index
      %144 = vector.load %arg4[%c0_116, %c0_117, %c0_118, %c0_119] : memref<1x4x16x16xf32, #tpu.memory_space<vmem>>, vector<1x1x16x16xf32>
      %145 = vector.shape_cast %144 : vector<1x1x16x16xf32> to vector<16x16xf32>
      %c0_120 = arith.constant 0 : index
      %c4 = arith.constant 4 : index
      %146 = memref.load %arg2[%c0_120, %c4] : memref<4x5xf32, #tpu.memory_space<smem>>
      %147 = vector.broadcast %146 : f32 to vector<16x16xf32>
      %148 = arith.mulf %145, %147 : vector<16x16xf32>
      %c0_121 = arith.constant 0 : index
      %c1_122 = arith.constant 1 : index
      %c0_123 = arith.constant 0 : index
      %c0_124 = arith.constant 0 : index
      %149 = vector.load %arg4[%c0_121, %c1_122, %c0_123, %c0_124] : memref<1x4x16x16xf32, #tpu.memory_space<vmem>>, vector<1x1x16x16xf32>
      %150 = vector.shape_cast %149 : vector<1x1x16x16xf32> to vector<16x16xf32>
      %c1_125 = arith.constant 1 : index
      %c4_126 = arith.constant 4 : index
      %151 = memref.load %arg2[%c1_125, %c4_126] : memref<4x5xf32, #tpu.memory_space<smem>>
      %152 = vector.broadcast %151 : f32 to vector<16x16xf32>
      %153 = arith.mulf %150, %152 : vector<16x16xf32>
      %154 = arith.addf %148, %153 : vector<16x16xf32>
      %c0_127 = arith.constant 0 : index
      %c2_128 = arith.constant 2 : index
      %c0_129 = arith.constant 0 : index
      %c0_130 = arith.constant 0 : index
      %155 = vector.load %arg4[%c0_127, %c2_128, %c0_129, %c0_130] : memref<1x4x16x16xf32, #tpu.memory_space<vmem>>, vector<1x1x16x16xf32>
      %156 = vector.shape_cast %155 : vector<1x1x16x16xf32> to vector<16x16xf32>
      %c2_131 = arith.constant 2 : index
      %c4_132 = arith.constant 4 : index
      %157 = memref.load %arg2[%c2_131, %c4_132] : memref<4x5xf32, #tpu.memory_space<smem>>
      %158 = vector.broadcast %157 : f32 to vector<16x16xf32>
      %159 = arith.mulf %156, %158 : vector<16x16xf32>
      %160 = arith.addf %154, %159 : vector<16x16xf32>
      %c0_133 = arith.constant 0 : index
      %c3_134 = arith.constant 3 : index
      %c0_135 = arith.constant 0 : index
      %c0_136 = arith.constant 0 : index
      %161 = vector.load %arg4[%c0_133, %c3_134, %c0_135, %c0_136] : memref<1x4x16x16xf32, #tpu.memory_space<vmem>>, vector<1x1x16x16xf32>
      %162 = vector.shape_cast %161 : vector<1x1x16x16xf32> to vector<16x16xf32>
      %c3_137 = arith.constant 3 : index
      %c4_138 = arith.constant 4 : index
      %163 = memref.load %arg2[%c3_137, %c4_138] : memref<4x5xf32, #tpu.memory_space<smem>>
      %164 = vector.broadcast %163 : f32 to vector<16x16xf32>
      %165 = arith.mulf %162, %164 : vector<16x16xf32>
      %166 = arith.addf %160, %165 : vector<16x16xf32>
      %c4_139 = arith.constant 4 : index
      %167 = memref.load %arg3[%c4_139] : memref<5xf32, #tpu.memory_space<smem>>
      %168 = vector.broadcast %167 : f32 to vector<16x16xf32>
      %169 = arith.addf %166, %168 : vector<16x16xf32>
      %cst_140 = arith.constant dense<0.000000e+00> : vector<16x128xf32>
      %170 = tpu.matmul %169, %31, %cst_140 {dimension_numbers = #tpu.dot_dimension_numbers<[1], [0], [0], [1], [0, 0, 1, 1], [], []>} : vector<16x16xf32>, vector<16x128xf32>, vector<16x128xf32> -> vector<16x128xf32>
      %c0_141 = arith.constant 0 : index
      %c512 = arith.constant 512 : index
      %171 = vector.load %arg8[%c0_141, %c512] : memref<16x640xf32, #tpu.memory_space<vmem>>, vector<16x128xf32>
      tpu.vector_store %arg8[%c0_141, %c512], %170 {strides = array<i32>} : memref<16x640xf32, #tpu.memory_space<vmem>>, vector<16x128xf32>,
    } else {
    }
    %c0 = arith.constant 0 : index
    %c0_1 = arith.constant 0 : index
    %3 = vector.load %arg5[%c0, %c0_1] : memref<64x16xf32, #tpu.memory_space<vmem>>, vector<64x16xf32>
    %c0_2 = arith.constant 0 : index
    %c0_3 = arith.constant 0 : index
    %4 = vector.load %arg8[%c0_2, %c0_3] : memref<16x640xf32, #tpu.memory_space<vmem>>, vector<16x640xf32>
    %cst = arith.constant dense<0.000000e+00> : vector<64x640xf32>
    %5 = tpu.matmul %3, %4, %cst {dimension_numbers = #tpu.dot_dimension_numbers<[1], [0], [0], [1], [0, 0, 1, 1], [], []>} : vector<64x16xf32>, vector<16x640xf32>, vector<64x640xf32> -> vector<64x640xf32>
    %6 = vector.extract_strided_slice %5 {offsets = [0, 0], sizes = [64, 128], strides = [1, 1]} : vector<64x640xf32> to vector<64x128xf32>
    %c0_i32_4 = arith.constant 0 : i32
    %7 = vector.broadcast %c0_i32_4 : i32 to vector<64x128xi32>
    %8 = vector.extract_strided_slice %5 {offsets = [0, 128], sizes = [64, 128], strides = [1, 1]} : vector<64x640xf32> to vector<64x128xf32>
    %9 = arith.cmpf ogt, %8, %6 : vector<64x128xf32>
    %10 = arith.select %9, %8, %6 : vector<64x128xi1>, vector<64x128xf32>
    %c1_i32 = arith.constant 1 : i32
    %11 = vector.broadcast %c1_i32 : i32 to vector<64x128xi32>
    %12 = arith.select %9, %11, %7 : vector<64x128xi1>, vector<64x128xi32>
    %13 = vector.extract_strided_slice %5 {offsets = [0, 256], sizes = [64, 128], strides = [1, 1]} : vector<64x640xf32> to vector<64x128xf32>
    %14 = arith.cmpf ogt, %13, %10 : vector<64x128xf32>
    %15 = arith.select %14, %13, %10 : vector<64x128xi1>, vector<64x128xf32>
    %c2_i32 = arith.constant 2 : i32
    %16 = vector.broadcast %c2_i32 : i32 to vector<64x128xi32>
    %17 = arith.select %14, %16, %12 : vector<64x128xi1>, vector<64x128xi32>
    %18 = vector.extract_strided_slice %5 {offsets = [0, 384], sizes = [64, 128], strides = [1, 1]} : vector<64x640xf32> to vector<64x128xf32>
    %19 = arith.cmpf ogt, %18, %15 : vector<64x128xf32>
    %20 = arith.select %19, %18, %15 : vector<64x128xi1>, vector<64x128xf32>
    %c3_i32 = arith.constant 3 : i32
    %21 = vector.broadcast %c3_i32 : i32 to vector<64x128xi32>
    %22 = arith.select %19, %21, %17 : vector<64x128xi1>, vector<64x128xi32>
    %23 = vector.extract_strided_slice %5 {offsets = [0, 512], sizes = [64, 128], strides = [1, 1]} : vector<64x640xf32> to vector<64x128xf32>
    %24 = arith.cmpf ogt, %23, %20 : vector<64x128xf32>
    %c4_i32 = arith.constant 4 : i32
    %25 = vector.broadcast %c4_i32 : i32 to vector<64x128xi32>
    %26 = arith.select %24, %25, %22 : vector<64x128xi1>, vector<64x128xi32>
    %27 = arith.trunci %26 : vector<64x128xi32> to vector<64x128xi8>
    %c0_5 = arith.constant 0 : index
    %c0_6 = arith.constant 0 : index
    %c0_7 = arith.constant 0 : index
    %28 = vector.load %arg7[%c0_5, %c0_6, %c0_7] : memref<1x64x128xi8, #tpu.memory_space<vmem>>, vector<1x64x128xi8>
    %29 = vector.shape_cast %28 : vector<1x64x128xi8> to vector<64x128xi8>
    %30 = vector.shape_cast %27 : vector<64x128xi8> to vector<1x64x128xi8>
    tpu.vector_store %arg7[%c0_5, %c0_6, %c0_7], %30 {strides = array<i32>} : memref<1x64x128xi8, #tpu.memory_space<vmem>>, vector<1x64x128xi8>,
    return
  }
  func.func @transform_0(%arg0: i32, %arg1: i32) -> (i32, i32) {
    %c0_i32 = arith.constant 0 : i32
    %c0_i32_0 = arith.constant 0 : i32
    %c0_i32_1 = arith.constant 0 : i32
    return %c0_i32, %c0_i32_0 : i32, i32
  }
  func.func @transform_1(%arg0: i32, %arg1: i32) -> i32 {
    %c0_i32 = arith.constant 0 : i32
    %c0_i32_0 = arith.constant 0 : i32
    return %c0_i32 : i32
  }
  func.func @transform_2(%arg0: i32, %arg1: i32) -> (i32, i32, i32, i32) {
    %c0_i32 = arith.constant 0 : i32
    %c0_i32_0 = arith.constant 0 : i32
    %c0_i32_1 = arith.constant 0 : i32
    %c0_i32_2 = arith.constant 0 : i32
    return %arg0, %c0_i32, %c0_i32_0, %c0_i32_1 : i32, i32, i32, i32
  }
  func.func @transform_3(%arg0: i32, %arg1: i32) -> (i32, i32) {
    %c0_i32 = arith.constant 0 : i32
    %c0_i32_0 = arith.constant 0 : i32
    return %arg1, %c0_i32 : i32, i32
  }
  func.func @transform_4(%arg0: i32, %arg1: i32) -> (i32, i32) {
    %c0_i32 = arith.constant 0 : i32
    %c0_i32_0 = arith.constant 0 : i32
    %c0_i32_1 = arith.constant 0 : i32
    return %c0_i32, %c0_i32_0 : i32, i32
  }
  func.func @transform_5(%arg0: i32, %arg1: i32) -> (i32, i32, i32) {
    %c0_i32 = arith.constant 0 : i32
    %c0_i32_0 = arith.constant 0 : i32
    return %arg0, %arg1, %c0_i32 : i32, i32, i32
  }
}

</mosaic_0001>

<bundles_post_ra>
// kernel: onnx_net_forward.1
= control target key start
LH: loop header
LB: loop body
LE: loop exit
PB: predicated region body
PF: predicated region fallthrough
CT: control target
= control target key end

     0   :  { %s2195_s0 = inlined_call_operand.hbm [shape: f32[4,5], index: 0, kind: input, shape index: {}]   ;;  %s2196_s1 = inlined_call_operand.vmem [shape: f32[5], index: 1, kind: input, shape index: {}]   ;;  %s2197_s2 = inlined_call_operand.hbm [shape: f32[2,4,16,16], index: 2, kind: input, shape index: {}]   ;;  %s2198_s3 = inlined_call_operand.hbm [shape: f32[128,16], index: 3, kind: input, shape index: {}]   ;;  %s2199_s4 = inlined_call_operand.hbm [shape: f32[16,128], index: 4, kind: input, shape index: {}]   ;;  %s2200_s5 = inlined_call_operand.vmem [shape: s8[2,128,128], index: 5, kind: output, shape index: {}]  }
   0x1   :  { %2206 = sst [smem:[#allocation19_spill]] %s2195_s0 }
   0x2   :  { %2207 = sst [smem:[#allocation20_spill]] %s2196_s1 }
   0x3   :  { %2208 = sst [smem:[#allocation21_spill]] %s2197_s2 }
   0x4   :  { %2209 = sst [smem:[#allocation22_spill]] %s2199_s4 }
   0x5   :  { %2210 = sst [smem:[#allocation23_spill]] %s2200_s5 }
   0x6   :  { %10 = vsyncpa [#allocation5], 0 }
   0x7   :  { %11 = vsyncpa [#allocation6], 0 }
   0x8   :  { %12 = vsyncpa [#allocation4], 0 }
   0x9   :  { %14 = vsyncpa [#allocation4 + $0x1], 0 }
   0xa   :  { %15 = vsyncpa [#allocation10], 0 }
   0xb   :  { %17 = vsyncpa [#allocation10 + $0x1], 0  ;;  %s1738_s18 = smov 0   ;;  %s1740_s19 = smov 0  }
   0xc   :  { %s1742_s20 = smov 0   ;;  %s1744_s21 = smov 0  }
   0xd   :  { %s1746_s22 = smov 0   ;;  %s1748_s23 = smov 0  }
   0xe   :  { %s1750_s24 = smov 0   ;;  %s1752_s25 = smov 0  }
   0xf   :  { %s1754_s26 = smov 0   ;;  %s1756_s27 = smov 0  }
  0x10   :  { %s1758_s28 = smov 0  }
  0x11 LB: > { %s2201_s29 = sadd.s32 4294967295, %s1700_s28   ;;  %p123_p0 = scmp.ne.s32.totalorder %s1664_s19, %s1660_s18  ;;  %s1700_s28 = sphi %s1758_s28, %s23_s28   ;;  %s1696_s27 = sphi %s1756_s27, %s2238_s27   ;;  %s1692_s26 = sphi %s1754_s26, %s2237_s26   ;;  %s1688_s25 = sphi %s1752_s25, %s2236_s25   ;;  %s1684_s24 = sphi %s1750_s24, %s2235_s24   ;;  %s1680_s23 = sphi %s1748_s23, %s2234_s23   ;;  %s1676_s22 = sphi %s1746_s22, %s2233_s22   ;;  %s1672_s21 = sphi %s1744_s21, %s2232_s21   ;;  %s1668_s20 = sphi %s1742_s20, %s2231_s20   ;;  %s1664_s19 = sphi %s1740_s19, %s2230_s19   ;;  %s1660_s18 = sphi %s1738_s18, %s2229_s18  }
  0x12   : > { %p1795_p1 = scmp.eq.s32.totalorder %s2201_s29, 0  ;;  %p1204_p2 = scmp.ge.s32.totalorder %s1700_s28, 1 }
  0x13   : > { %p183_p3 = scmp.lt.s32.totalorder %s1700_s28, 5  ;;  %s2213_s4 = sld [smem:[#allocation22_spill]] }
  0x14   : > { %p1803_p4 = por %p123_p0, %p1795_p1  ;;  %s1702_s11 = smov [#allocation11]  }
  0x15   : > { %p1810_p5 = pnand %p1204_p2, %p183_p3  ;;  %s216_s12 = sshll.u32 %s1702_s11, 4  ;;  %s217_s12 = int_to_ptr.vmem [resolvable:$true] %s216_s12 }
  0x16   : > { %s2202_s13 = smov 128   ;;  %s2203_s14 = smov 8  }
  0x17   : > { %p1356_p6 = pneg %p1810_p5  ;;  %s2215_s0 = sld [smem:[#allocation19_spill]] }
  0x18   : > { %s1705_s18 = smov [#allocation3]   ;;  %s2216_s1 = sld [smem:[#allocation20_spill]] }
  0x19   : > { %s214_s9 = sshll.u32 %s2213_s4, 4  ;;  %p1357_p7 = pnand %p1356_p6, %p1795_p1  ;;  %s215_s9 = int_to_ptr.hbm [resolvable:$true] %s214_s9 }
  0x1a   : > { %s1706_s29 = smov [#allocation7]   ;;  %s35_s4 = sadd.s32 1, %s1696_s27 }
  0x1b   : > { %1365 = dma.hbm_to_vmem [thread:$0]  (!%p1357_p7), %s215_s9, 256, %s217_s12, [#allocation10], %s2202_s13, %s2202_s13, %s2203_s14  }
  0x1c   : > { %s84_s5 = sadd.s32 1, %s1680_s23  ;;  %p91_p8 = scmp.ne.s32.totalorder %s1680_s23, %s1676_s22 }
  0x1d   : > { %s195_s17 = sshll.u32 %s2215_s0, 4  ;;  %p92_p9 = scmp.eq.s32.totalorder %s1700_s28, 0  ;;  %s196_s17 = int_to_ptr.hbm [resolvable:$true] %s195_s17 }
  0x1e   : > { %1359 = dma.hbm_to_smem (!%p1357_p7), %s196_s17, 64, %s1705_s18, [#allocation5]  }
  0x1f   : > { %s205_s11 = sshll.u32 %s2216_s1, 4  ;;  %p97_p10 = scmp.ne.s32.totalorder %s1676_s22, %s1672_s21  ;;  %s206_s11 = int_to_ptr.vmem [resolvable:$true] %s205_s11 }
  0x20   : > { %1362 = dma.vmem_to_smem (!%p1357_p7), %s206_s11, 16, %s1706_s29, [#allocation6]  }
  0x21   : > { %p1376_p11 = scmp.lt.s32.totalorder %s1700_s28, 4  ;;  %s230_s9 = sand.u32 1, %s1680_s23  }
  0x22   : > { %p93_p12 = por %p92_p9, %p91_p8  ;;  %p1840_p13 = por %p1795_p1, %p97_p10 }
  0x23   : > { %s1209_s29 = sshll.u32 %s230_s9, 6  ;;  %s1330_s15 = sshll.u32 %s1696_s27, 6 }
  0x24   : > { %s2218_s2 = sld [smem:[#allocation21_spill]]  ;;  %s234_s18 = scalar_lea.vmem [#allocation8], %s1209_s29 }
  0x25   : > { %s242_s7 = sshll.u32 %s234_s18, 4  ;;  %p1367_p0 = pnand %p1376_p11, %p93_p12  ;;  %s243_s7 = int_to_ptr.vmem [resolvable:$true] %s242_s7 }
  0x26   : > { %s231_s11 = scalar_lea.sflag [#allocation4], %s230_s9  ;;  %s32_s16 = sadd.s32 1, %s1692_s26 }
  0x27   : > { %p33_p2 = scmp.ge.s32.totalorder %s32_s16, 2  ;;  %p117_p3 = scmp.ne.s32.totalorder %s1668_s20, %s1664_s19 }
  0x28   : > { %s252_s29 = sand.u32 1, %s1700_s28  }
  0x29   : > { %s2240_s16 = smov (%p33_p2, %s32_s16), 0  ;;  %s2242_s4 = smov (!%p33_p2, %s35_s4), %s1696_s27 }
  0x2a   : > { %s239_s21 = scalar_lea.hbm %s2218_s2, %s1330_s15  ;;  %s110_s15 = sadd.s32 1, %s1668_s20 }
  0x2b   : > { %s240_s8 = sshll.u32 %s239_s21, 4  ;;  %2219 = sst [smem:[#allocation17_spill]] %s2240_s16  ;;  %s241_s8 = int_to_ptr.hbm [resolvable:$true] %s240_s8 }
  0x2c   : > { %1369 = dma.hbm_to_vmem [thread:$0]  (!%p1367_p0), %s241_s8, 1024, %s243_s7, %s231_s11, %s2202_s13, %s2202_s13, %s2203_s14  }
  0x2d   : > { %s107_s17 = ssub.s32 %s1692_s26, %s2240_s16  ;;  %p1865_p6 = por %p117_p3, %p92_p9 }
  0x2e   : > { %p37_p7 = scmp.ge.s32.totalorder %s2242_s4, 2  ;;  %p108_p8 = scmp.eq.s32.totalorder %s107_s17, 0 }
  0x2f   : > { %s254_s21 = sand.u32 1, %s1668_s20   ;;  %s1331_s11 = sshll.u32 %s1692_s26, 6 }
  0x30   : > { %s2244_s4 = smov (%p37_p7, %s2242_s4), 0  ;;  %s1212_s8 = sshll.u32 %s254_s21, 6 }
  0x31   : > { %2221 = sst [smem:[#allocation18_spill]] %s2244_s4  ;;  %s81_s7 = ssub.s32 %s1696_s27, %s2244_s4 }
  0x32   : > { %s1873_s18 = scalar_select %p108_p8, %s1668_s20, %s110_s15  }
  0x33   : > { %p82_p10 = scmp.eq.s32.totalorder %s81_s7, 0  ;;  %s256_s13 = scalar_lea.vmem [#allocation9], %s1212_s8 }
  0x34   : > { %s264_s14 = sshll.u32 %s256_s13, 4  ;;  %s261_s16 = scalar_lea.hbm %s2198_s3, %s1331_s11  ;;  %s265_s14 = int_to_ptr.vmem [resolvable:$true] %s264_s14 }
  0x35   : > { %s1881_s0 = scalar_select %p82_p10, %s1680_s23, %s84_s5  }
  0x36   : > { %s262_s17 = sshll.u32 %s261_s16, 4  ;;  %p1370_p9 = pnand %p1376_p11, %p1865_p6  ;;  %s263_s17 = int_to_ptr.hbm [resolvable:$true] %s262_s17 }
  0x37   : > { %s253_s15 = scalar_lea.sflag [#allocation10], %s252_s29  ;;  %s2222_s4 = smov 8  }
  0x38   : > { %s2223_s21 = smov 128   ;;  %276 = sbr.rel (%p1810_p5) target bundleno = 473 (0x1d9), region = 40 }
  0x39   : > { %1372 = dma.hbm_to_vmem [thread:$0]  (!%p1370_p9), %s263_s17, 1024, %s265_s14, %s253_s15, %s2223_s21, %s2223_s21, %s2222_s4  }
  0x3d   : > { %1639 = dma.done.wait (%p1795_p1), [#allocation5], 64  }
  0x3e   : > { %1641 = vsyncadd (%p1795_p1), [#allocation5], 4294967232 }
  0x3f   : > { %1643 = dma.done.wait (%p1795_p1), [#allocation6], 16  }
  0x40   : > { %1645 = vsyncadd (%p1795_p1), [#allocation6], 4294967280  ;;  %s288_s1 = sand.u32 1, %s1676_s22  }
  0x41   : > { %s1218_s2 = sshll.u32 %s288_s1, 6  ;;  %s289_s4 = scalar_lea.sflag [#allocation4], %s288_s1 }
  0x42   : > { %s1904_s5 = scalar_lea.vmem [#allocation8], %s1218_s2 }
  0x43   : > { %1647 = dma.done.wait (%p1840_p13), %s289_s4, 1024  }
  0x44   : > { %1649 = vsyncadd (%p1840_p13), %s289_s4, 4294966272  ;;  %s2224_s10 = sadd.s32 4294967295, %s1700_s28   ;;  %s300_s14 = sand.u32 1, %s1664_s19  }
  0x45   : > { %s298_s13 = sand.u32 1, %s2224_s10   ;;  %s1219_s16 = sshll.u32 %s300_s14, 6 }
  0x46   : > { %s299_s29 = scalar_lea.sflag [#allocation10], %s298_s13  ;;  %s1913_s9 = scalar_lea.vmem [#allocation9], %s1219_s16 }
  0x47   : > { %1651 = dma.done.wait (%p1803_p4), %s299_s29, 1024  }
  0x48   : > { %1653 = vsyncadd (%p1803_p4), %s299_s29, 4294966272 }
  0x49   : > { %1655 = dma.done.wait (%p1795_p1), [#allocation10], 256  }
  0x4a   : > { %1657 = vsyncadd (%p1795_p1), [#allocation10], 4294967040 }
  0x4b   : > { %313 = sfence }
  0x4c   : > { %s1221_s12 = sshll.u32 %s1684_s24, 3  ;;  %p347_p5 = scmp.lt.s32.totalorder %s1688_s25, 1 }
  0x4d   : > { %p349_p11 = scmp.lt.s32.totalorder %s1221_s12, 15  ;;  %s2225_s15 = sld [smem:[#allocation23_spill]] }
  0x4e   : > { %s2246_s25 = smov (!%p347_p5, %s1688_s25), 1  ;;  %p1224_p4 = scmp.ne.s32.totalorder %s1684_s24, 0 }
  0x4f   : > { %s2248_s12 = smov (!%p349_p11, %s1221_s12), 15  ;;  %s1222_s7 = sshll.u32 %s2246_s25, 4 }
  0x50   : > { %s352_s8 = sadd.s32 %s1222_s7, %s2248_s12  ;;  %359 = sbr.rel (%p1224_p4) target bundleno = 254 (0xfe), region = 64 }
  0x51   : > { %s1223_s11 = sshll.u32 %s352_s8, 1  ;;  %s364_s30 = sld [smem:[#allocation3]] (!%p1224_p4) }
  0x52   : > { %s1932_s25 = sld [smem:[#allocation3 + $0x80]] (!%p1224_p4) }
  0x53   : > { %s1929_s21 = scalar_lea.vmem %s2225_s15, %s1223_s11  ;;  %s1934_s1 = sld [smem:[#allocation3 + $0x100]] (!%p1224_p4) }
  0x54   : > { %s1936_s24 = sld [smem:[#allocation3 + $0x180]] (!%p1224_p4) }
  0x55   : > { %v361_v0 = vld [vmem:[#allocation11 + $0x8] sm:$0xff]  ;;  %v360_v1 = vld [vmem:[#allocation11] sm:$0xff]  ;;  %s1941_s2 = sld [smem:[#allocation7]]  ;;  %v1947_v4 = vld [vmem:[%s1904_s5 + $0x10] sm:$0xff]  ;;  %vm399_vm0 = vcmask 130048  }
  0x56   : > { %420 = vmatpush.msra.mxu0 %v361_v0  ;;  %1332 = vmatpush.msra.mxu1 %v361_v0  ;;  %v1939_v2 = vld [vmem:[%s1904_s5] sm:$0xff]  ;;  %v1944_v3 = vld [vmem:[%s1904_s5 + $0x8] sm:$0xff]  ;;  %v1950_v5 = vld [vmem:[%s1904_s5 + $0x18] sm:$0xff]  ;;  %s1952_s4 = sld [smem:[#allocation3 + $0x2]] }
  0x57   : > { %550 = vmatpush.msra.mxu2 %v361_v0  ;;  %615 = vmatpush.msra.mxu3 %v361_v0  ;;  %v365_v6 = vstv %s364_s30  ;;  %v1955_v7 = vld [vmem:[%s1904_s5 + $0x20] sm:$0xff]  ;;  %v1958_v8 = vld [vmem:[%s1904_s5 + $0x28] sm:$0xff]  ;;  %s1960_s10 = sld [smem:[#allocation3 + $0x82]]  ;;  %v1965_v11 = vld [vmem:[%s1904_s5 + $0x30] sm:$0xff] }
  0x58   : > { %421 = vmatpush.msra.mxu0 %v360_v1  ;;  %1333 = vmatpush.msra.mxu1 %v360_v1  ;;  %v366_v9 = vmul.f32 %v365_v6, %v1939_v2  ;;  %v372_v10 = vstv %s1932_s25  ;;  %v367_v12 = vmul.f32 %v365_v6, %v1944_v3  ;;  %s1968_s13 = sld [smem:[#allocation3 + $0x102]]  ;;  %v1974_v16 = vld [vmem:[%s1904_s5 + $0x38] sm:$0xff] }
  0x59   : > { %551 = vmatpush.msra.mxu2 %v360_v1  ;;  %616 = vmatpush.msra.mxu3 %v360_v1  ;;  %v373_v13 = vmul.f32 %v1947_v4, %v372_v10  ;;  %v381_v14 = vstv %s1934_s1  ;;  %v374_v15 = vmul.f32 %v1950_v5, %v372_v10  ;;  %s1976_s14 = sld [smem:[#allocation3 + $0x182]] }
  0x5a   : > { %485 = vmatpush.msrb.mxu1 %v361_v0  ;;  %680 = vmatpush.msrb.mxu0 %v361_v0  ;;  %v382_v17 = vmul.f32 %v1955_v7, %v381_v14  ;;  %v390_v18 = vstv %s1936_s24  ;;  %v383_v19 = vmul.f32 %v1958_v8, %v381_v14  ;;  %s1981_s16 = sld [smem:[#allocation7 + $0x2]] }
  0x5b   : > { %v375_v20 = vadd.f32 %v373_v13, %v366_v9  ;;  %v391_v21 = vmul.f32 %v1965_v11, %v390_v18  ;;  %v376_v22 = vadd.f32 %v374_v15, %v367_v12  ;;  %s1984_s29 = sld [smem:[#allocation3 + $0x3]]  ;;  %v396_v23 = vstv %s1941_s2 }
  0x5c   : > { %486 = vmatpush.msrb.mxu1 %v360_v1  ;;  %681 = vmatpush.msrb.mxu0 %v360_v1  ;;  %v392_v24 = vmul.f32 %v1974_v16, %v390_v18  ;;  %v499_v25 = vstv %s1952_s4  ;;  %s1989_s5 = sld [smem:[#allocation3 + $0x83]] }
  0x5d   : > { %v384_v26 = vadd.f32 %v382_v17, %v375_v20  ;;  %v385_v27 = vadd.f32 %v383_v19, %v376_v22  ;;  %v500_v28 = vmul.f32 %v499_v25, %v1939_v2  ;;  %v505_v29 = vstv %s1960_s10  ;;  %s1993_s12 = sld [smem:[#allocation3 + $0x103]] }
  0x5e   : > { %v506_v30 = vmul.f32 %v1947_v4, %v505_v29  ;;  %v513_v31 = vstv %s1968_s13  ;;  %s1997_s7 = sld [smem:[#allocation3 + $0x183]]  ;;  %v501_v32 = vmul.f32 %v499_v25, %v1944_v3  ;;  %v507_v33 = vmul.f32 %v1950_v5, %v505_v29 }
  0x5f   : > { %v393_v34 = vadd.f32 %v391_v21, %v384_v26  ;;  %v394_v35 = vadd.f32 %v392_v24, %v385_v27  ;;  %v514_v36 = vmul.f32 %v1955_v7, %v513_v31  ;;  %v521_v37 = vstv %s1976_s14  ;;  %s2003_s8 = sld [smem:[#allocation7 + $0x3]] }
  0x60   : > { %v508_v38 = vadd.f32 %v506_v30, %v500_v28  ;;  %v522_v39 = vmul.f32 %v1965_v11, %v521_v37  ;;  %v527_v40 = vstv %s1981_s16  ;;  %s2007_s11 = sld [smem:[#allocation3 + $0x1]]  ;;  %v509_v41 = vadd.f32 %v507_v33, %v501_v32 }
  0x61   : > { %v397_v42 = vadd.f32 %v396_v23, %v393_v34  ;;  %v398_v43 = vadd.f32 %v396_v23, %v394_v35  ;;  %v564_v44 = vstv %s1984_s29  ;;  %s2010_s6 = sld [smem:[#allocation3 + $0x81]]  ;;  %v515_v45 = vmul.f32 %v1958_v8, %v513_v31 }
  0x62   : > { %v516_v46 = vadd.f32 %v514_v36, %v508_v38  ;;  %v565_v47 = vmul.f32 %v564_v44, %v1939_v2  ;;  %v570_v48 = vstv %s1989_s5  ;;  %s2015_s17 = sld [smem:[#allocation3 + $0x101]]  ;;  %v523_v49 = vmul.f32 %v1974_v16, %v521_v37 }
  0x63   : > { %1234 = vmatmul.msk.f32.vlgmr.msra.gmra.mxu0 %vm399_vm0, %v397_v42  ;;  %1235 = vmatmul.msk.f32.vlgmr.msra.gmra.mxu1 %vm399_vm0, %v398_v43  ;;  %v571_v50 = vmul.f32 %v1947_v4, %v570_v48  ;;  %v578_v51 = vstv %s1993_s12  ;;  %s2022_s15 = sld [smem:[#allocation3 + $0x181]]  ;;  %v517_v52 = vadd.f32 %v515_v45, %v509_v41  ;;  %v566_v53 = vmul.f32 %v564_v44, %v1944_v3 }
  0x64   : > { %v524_v54 = vadd.f32 %v522_v39, %v516_v46  ;;  %v579_v55 = vmul.f32 %v1955_v7, %v578_v51  ;;  %v586_v56 = vstv %s1997_s7  ;;  %s2027_s30 = sld [smem:[#allocation7 + $0x1]]  ;;  %v572_v57 = vmul.f32 %v1950_v5, %v570_v48 }
  0x65   : > { %v573_v58 = vadd.f32 %v571_v50, %v565_v47  ;;  %v587_v59 = vmul.f32 %v1965_v11, %v586_v56  ;;  %s2031_s25 = sld [smem:[#allocation3 + $0x4]]  ;;  %v525_v60 = vadd.f32 %v523_v49, %v517_v52  ;;  %v580_v0 = vmul.f32 %v1958_v8, %v578_v51 }
  0x66   : > { %v528_v61 = vadd.f32 %v527_v40, %v524_v54  ;;  %v434_v62 = vstv %s2007_s11  ;;  %s2034_s1 = sld [smem:[#allocation3 + $0x84]]  ;;  %v574_v63 = vadd.f32 %v572_v57, %v566_v53  ;;  %v592_v6 = vstv %s2003_s8 }
  0x67   : > { %v581_v1 = vadd.f32 %v579_v55, %v573_v58  ;;  %v435_v9 = vmul.f32 %v434_v62, %v1939_v2  ;;  %v440_v10 = vstv %s2010_s6  ;;  %s2040_s24 = sld [smem:[#allocation3 + $0x104]]  ;;  %v588_v15 = vmul.f32 %v1974_v16, %v586_v56 }
  0x68   : > { %1260 = vmatmul.msk.f32.vlgmr.msra.gmra.mxu2 %vm399_vm0, %v528_v61  ;;  %v441_v12 = vmul.f32 %v1947_v4, %v440_v10  ;;  %v448_v13 = vstv %s2015_s17  ;;  %s2045_s2 = sld [smem:[#allocation3 + $0x184]]  ;;  %v582_v14 = vadd.f32 %v580_v0, %v574_v63  ;;  %v436_v20 = vmul.f32 %v434_v62, %v1944_v3 }
  0x69   : > { %v589_v17 = vadd.f32 %v587_v59, %v581_v1  ;;  %v449_v18 = vmul.f32 %v1955_v7, %v448_v13  ;;  %v456_v19 = vstv %s2022_s15  ;;  %s2053_s4 = sld [smem:[#allocation7 + $0x4]]  ;;  %v529_v24 = vadd.f32 %v527_v40, %v525_v60 }
  0x6a   : > { %v443_v21 = vadd.f32 %v441_v12, %v435_v9  ;;  %v457_v22 = vmul.f32 %v1965_v11, %v456_v19  ;;  %v462_v23 = vstv %s2027_s30  ;;  %v442_v27 = vmul.f32 %v1950_v5, %v440_v10 }
  0x6b   : > { %v593_v25 = vadd.f32 %v592_v6, %v589_v17  ;;  %v629_v26 = vstv %s2031_s25  ;;  %v450_v28 = vmul.f32 %v1958_v8, %v448_v13  ;;  %v590_v32 = vadd.f32 %v588_v15, %v582_v14 }
  0x6c   : > { %v451_v29 = vadd.f32 %v449_v18, %v443_v21  ;;  %v630_v30 = vmul.f32 %v629_v26, %v1939_v2  ;;  %v635_v31 = vstv %s2034_s1  ;;  %v444_v35 = vadd.f32 %v442_v27, %v436_v20 }
  0x6d   : > { %1273 = vmatmul.msk.f32.vlgmr.msra.gmra.mxu3 %vm399_vm0, %v593_v25  ;;  %v636_v33 = vmul.f32 %v1947_v4, %v635_v31  ;;  %v643_v34 = vstv %s2040_s24  ;;  %v458_v36 = vmul.f32 %v1974_v16, %v456_v19  ;;  %v631_v40 = vmul.f32 %v629_v26, %v1944_v3 }
  0x6e   : > { %v459_v37 = vadd.f32 %v457_v22, %v451_v29  ;;  %v644_v38 = vmul.f32 %v1955_v7, %v643_v34  ;;  %v651_v39 = vstv %s2045_s2  ;;  %v452_v42 = vadd.f32 %v450_v28, %v444_v35 }
  0x6f   : > { %v638_v41 = vadd.f32 %v636_v33, %v630_v30  ;;  %v652_v2 = vmul.f32 %v1965_v11, %v651_v39  ;;  %v637_v4 = vmul.f32 %v1950_v5, %v635_v31  ;;  %v645_v44 = vmul.f32 %v1958_v8, %v643_v34 }
  0x70   : > { %v463_v43 = vadd.f32 %v462_v23, %v459_v37  ;;  %1261 = vmatmul.msk.f32.gmra.mxu2 %vm399_vm0, %v529_v24  ;;  %v594_v46 = vadd.f32 %v592_v6, %v590_v32  ;;  %v657_v47 = vstv %s2053_s4  ;;  %v460_v7 = vadd.f32 %v458_v36, %v452_v42 }
  0x71   : > { %v646_v45 = vadd.f32 %v644_v38, %v638_v41  ;;  %v639_v48 = vadd.f32 %v637_v4, %v631_v40  ;;  %v653_v3 = vmul.f32 %v1974_v16, %v651_v39 }
  0x72   : > { %1247 = vmatmul.msk.f32.vlgmr.msrb.gmra.mxu1 %vm399_vm0, %v463_v43  ;;  %v464_v51 = vadd.f32 %v462_v23, %v460_v7 }
  0x73   : > { %v654_v49 = vadd.f32 %v652_v2, %v646_v45  ;;  %v647_v50 = vadd.f32 %v645_v44, %v639_v48 }
  0x75   : > { %v658_v11 = vadd.f32 %v657_v47, %v654_v49  ;;  %1274 = vmatmul.msk.f32.gmra.mxu3 %vm399_vm0, %v594_v46  ;;  %v655_v5 = vadd.f32 %v653_v3, %v647_v50 }
  0x77   : > { %1286 = vmatmul.msk.f32.vlgmr.msrb.gmra.mxu0 %vm399_vm0, %v658_v11  ;;  %v659_v8 = vadd.f32 %v657_v47, %v655_v5 }
  0x7a   : > { %1248 = vmatmul.msk.f32.gmra.mxu1 %vm399_vm0, %v464_v51 }
  0x7f   : > { %1287 = vmatmul.msk.f32.gmra.mxu0 %vm399_vm0, %v659_v8 }
  0xe0   : > { %v423_v52 = vpop.f32.mrf.mxu0  ;;  %v426_v53 = vpop.f32.mrf.mxu1 }
  0xe1   : > { %429 = vst [vmem:[#allocation2 + $0x18] sm:$0xff] %v423_v52 }
  0xe2   : > { %430 = vst [vmem:[#allocation2] sm:$0xff] %v426_v53 }
  0xeb   : > { %v553_v54 = vpop.f32.mrf.mxu2 }
  0xec   : > { %559 = vst [vmem:[#allocation2 + $0x48] sm:$0xff] %v553_v54 }
  0xef   : > { %v488_v16 = vpop.f32.mrf.mxu1 }
  0xf0   : > { %494 = vst [vmem:[#allocation2 + $0x30] sm:$0xff] %v488_v16  ;;  %v618_v55 = vpop.f32.mrf.mxu3 }
  0xf1   : > { %624 = vst [vmem:[#allocation2 + $0x28] sm:$0xff] %v618_v55 }
  0xf3   : > { %v556_v56 = vpop.f32.mrf.mxu2 }
  0xf4   : > { %v683_v57 = vpop.f32.mrf.mxu0  ;;  %560 = vst [vmem:[#allocation2 + $0x38] sm:$0xff] %v556_v56 }
  0xf5   : > { %689 = vst [vmem:[#allocation2 + $0x20] sm:$0xff] %v683_v57 }
  0xf7   : > { %v491_v58 = vpop.f32.mrf.mxu1 }
  0xf8   : > { %495 = vst [vmem:[#allocation2 + $0x8] sm:$0xff] %v491_v58  ;;  %v621_v59 = vpop.f32.mrf.mxu3 }
  0xf9   : > { %625 = vst [vmem:[#allocation2 + $0x10] sm:$0xff] %v621_v59 }
  0xfc   : > { %v686_v60 = vpop.f32.mrf.mxu0 }
  0xfd   : > { %690 = vst [vmem:[#allocation2 + $0x40] sm:$0xff] %v686_v60 }
  0xfe PF: > { %v704_v61 = vld [vmem:[#allocation2] sm:$0xff]  ;;  %v699_v62 = vld [vmem:[#allocation2 + $0x18] sm:$0xff]  ;;  %vm709_vm1 = vcmask 130048   ;;  %v695_v0 = vld [vmem:[%s1913_s9 + $0x20] sm:$0xff]  ;;  %v1707_v35 = vmov 0  }
  0xff   : > { %1334 = vmatpush.msra.mxu1 %v704_v61  ;;  %1335 = vmatpush.msra.mxu2 %v704_v61  ;;  %v693_v63 = vld [vmem:[%s1913_s9 + $0x10] sm:$0xff]  ;;  %v706_v1 = vld [vmem:[#allocation2 + $0x38] sm:$0xff]  ;;  %v705_v9 = vld [vmem:[#allocation2 + $0x8] sm:$0xff] }
 0x100   : > { %1336 = vmatpush.msra.mxu3 %v704_v61  ;;  %748 = vmatpush.msra.mxu0 %v704_v61  ;;  %v697_v6 = vld [vmem:[%s1913_s9 + $0x30] sm:$0xff]  ;;  %v707_v10 = vld [vmem:[#allocation2 + $0x10] sm:$0xff]  ;;  %v701_v12 = vld [vmem:[#allocation2 + $0x48] sm:$0xff] }
 0x101   : > { %1337 = vmatpush.msra.mxu1 %v699_v62  ;;  %1338 = vmatpush.msra.mxu2 %v699_v62  ;;  %v700_v13 = vld [vmem:[#allocation2 + $0x30] sm:$0xff]  ;;  %v702_v15 = vld [vmem:[#allocation2 + $0x28] sm:$0xff]  ;;  %v696_v19 = vld [vmem:[%s1913_s9 + $0x28] sm:$0xff] }
 0x102   : > { %1290 = vmatmul.msk.f32.vlgmr.msra.gmra.mxu1 %vm709_vm1, %v693_v63  ;;  %1292 = vmatmul.msk.f32.vlgmr.msra.gmra.mxu2 %vm709_vm1, %v695_v0  ;;  %v691_v14 = vld [vmem:[%s1913_s9] sm:$0xff]  ;;  %v694_v18 = vld [vmem:[%s1913_s9 + $0x18] sm:$0xff]  ;;  %v703_v20 = vld [vmem:[#allocation2 + $0x20] sm:$0xff] }
 0x103   : > { %830 = vmatpush.msrb.mxu2 %v706_v1  ;;  %1339 = vmatpush.msra.mxu3 %v699_v62  ;;  %v698_v21 = vld [vmem:[%s1913_s9 + $0x38] sm:$0xff]  ;;  %v692_v22 = vld [vmem:[%s1913_s9 + $0x8] sm:$0xff] }
 0x104   : > { %1294 = vmatmul.msk.f32.vlgmr.msra.gmra.mxu3 %vm709_vm1, %v697_v6  ;;  %789 = vmatpush.msrb.mxu1 %v705_v9  ;;  %v708_v17 = vld [vmem:[#allocation2 + $0x40] sm:$0xff] }
 0x105   : > { %871 = vmatpush.msrb.mxu3 %v707_v10  ;;  %831 = vmatpush.msrb.mxu2 %v701_v12 }
 0x106   : > { %749 = vmatpush.msra.mxu0 %v699_v62  ;;  %790 = vmatpush.msrb.mxu1 %v700_v13 }
 0x107   : > { %1288 = vmatmul.msk.f32.vlgmr.msra.gmra.mxu0 %vm709_vm1, %v691_v14  ;;  %872 = vmatpush.msrb.mxu3 %v702_v15 }
 0x108   : > { %912 = vmatpush.msrb.mxu0 %v708_v17 }
 0x10a   : > { %1291 = vmatmul.msk.f32.gmra.mxu1 %vm709_vm1, %v694_v18  ;;  %1293 = vmatmul.msk.f32.gmra.mxu2 %vm709_vm1, %v696_v19 }
 0x10b   : > { %913 = vmatpush.msrb.mxu0 %v703_v20 }
 0x10c   : > { %1295 = vmatmul.msk.f32.gmra.mxu3 %vm709_vm1, %v698_v21 }
 0x10f   : > { %1289 = vmatmul.msk.f32.gmra.mxu0 %vm709_vm1, %v692_v22 }
 0x112   : > { %1296 = vmatmul.msk.f32.vlgmr.msrb.gmra.mxu1 %vm709_vm1, %v691_v14  ;;  %1304 = vmatmul.msk.f32.vlgmr.msrb.gmra.mxu2 %vm709_vm1, %v691_v14 }
 0x114   : > { %1312 = vmatmul.msk.f32.vlgmr.msrb.gmra.mxu3 %vm709_vm1, %v691_v14 }
 0x117   : > { %1320 = vmatmul.msk.f32.vlgmr.msrb.gmra.mxu0 %vm709_vm1, %v691_v14 }
 0x11a   : > { %1297 = vmatmul.msk.f32.gmra.mxu1 %vm709_vm1, %v692_v22  ;;  %1305 = vmatmul.msk.f32.gmra.mxu2 %vm709_vm1, %v692_v22 }
 0x11c   : > { %1313 = vmatmul.msk.f32.gmra.mxu3 %vm709_vm1, %v692_v22 }
 0x11f   : > { %1321 = vmatmul.msk.f32.gmra.mxu0 %vm709_vm1, %v692_v22 }
 0x122   : > { %1298 = vmatmul.msk.f32.gmra.mxu1 %vm709_vm1, %v693_v63  ;;  %1306 = vmatmul.msk.f32.gmra.mxu2 %vm709_vm1, %v693_v63 }
 0x124   : > { %1314 = vmatmul.msk.f32.gmra.mxu3 %vm709_vm1, %v693_v63 }
 0x127   : > { %1322 = vmatmul.msk.f32.gmra.mxu0 %vm709_vm1, %v693_v63 }
 0x12a   : > { %1299 = vmatmul.msk.f32.gmra.mxu1 %vm709_vm1, %v694_v18  ;;  %1307 = vmatmul.msk.f32.gmra.mxu2 %vm709_vm1, %v694_v18 }
 0x12c   : > { %1315 = vmatmul.msk.f32.gmra.mxu3 %vm709_vm1, %v694_v18 }
 0x12f   : > { %1323 = vmatmul.msk.f32.gmra.mxu0 %vm709_vm1, %v694_v18 }
 0x132   : > { %1300 = vmatmul.msk.f32.gmra.mxu1 %vm709_vm1, %v695_v0  ;;  %1308 = vmatmul.msk.f32.gmra.mxu2 %vm709_vm1, %v695_v0 }
 0x134   : > { %1316 = vmatmul.msk.f32.gmra.mxu3 %vm709_vm1, %v695_v0 }
 0x137   : > { %1324 = vmatmul.msk.f32.gmra.mxu0 %vm709_vm1, %v695_v0 }
 0x13a   : > { %1301 = vmatmul.msk.f32.gmra.mxu1 %vm709_vm1, %v696_v19  ;;  %1309 = vmatmul.msk.f32.gmra.mxu2 %vm709_vm1, %v696_v19 }
 0x13c   : > { %1317 = vmatmul.msk.f32.gmra.mxu3 %vm709_vm1, %v696_v19 }
 0x13f   : > { %1325 = vmatmul.msk.f32.gmra.mxu0 %vm709_vm1, %v696_v19 }
 0x142   : > { %1302 = vmatmul.msk.f32.gmra.mxu1 %vm709_vm1, %v697_v6  ;;  %1310 = vmatmul.msk.f32.gmra.mxu2 %vm709_vm1, %v697_v6 }
 0x144   : > { %1318 = vmatmul.msk.f32.gmra.mxu3 %vm709_vm1, %v697_v6 }
 0x147   : > { %1326 = vmatmul.msk.f32.gmra.mxu0 %vm709_vm1, %v697_v6 }
 0x14a   : > { %1303 = vmatmul.msk.f32.gmra.mxu1 %vm709_vm1, %v698_v21  ;;  %1311 = vmatmul.msk.f32.gmra.mxu2 %vm709_vm1, %v698_v21 }
 0x14c   : > { %1319 = vmatmul.msk.f32.gmra.mxu3 %vm709_vm1, %v698_v21 }
 0x14f   : > { %1327 = vmatmul.msk.f32.gmra.mxu0 %vm709_vm1, %v698_v21 }
 0x17f   : > { %v757_v23 = vpop.f32.mrf.mxu1 }
 0x184   : > { %v751_v24 = vpop.f32.mrf.mxu0 }
 0x185   : > { %v2126_v25 = vpop.f32.mrf.mxu2 }
 0x187   : > { %v2128_v26 = vpop.f32.mrf.mxu1  ;;  %v2130_v27 = vpop.f32.mrf.mxu3 }
 0x18c   : > { %v754_v28 = vpop.f32.mrf.mxu0 }
 0x18d   : > { %v2132_v29 = vpop.f32.mrf.mxu2 }
 0x18f   : > { %v2134_v30 = vpop.f32.mrf.mxu3  ;;  %v792_v31 = vpop.f32.mrf.mxu1 }
 0x190   : > { %vm939_vm2 = vcmp.gt.f32.partialorder %v792_v31, %v751_v24 }
 0x191   : > { %v947_v33 = vsel %vm939_vm2, %v792_v31, %v751_v24  ;;  %v955_v36 = vsel %vm939_vm2, 1, %v1707_v35 }
 0x194   : > { %v915_v32 = vpop.f32.mrf.mxu0 }
 0x195   : > { %v833_v34 = vpop.f32.mrf.mxu2 }
 0x196   : > { %vm963_vm3 = vcmp.gt.f32.partialorder %v833_v34, %v947_v33 }
 0x197   : > { %v971_v37 = vsel %vm963_vm3, %v833_v34, %v947_v33  ;;  %v979_v38 = vsel %vm963_vm3, 2, %v955_v36  ;;  %v795_v39 = vpop.f32.mrf.mxu1  ;;  %v874_v40 = vpop.f32.mrf.mxu3 }
 0x198   : > { %vm987_vm4 = vcmp.gt.f32.partialorder %v874_v40, %v971_v37  ;;  %vm940_vm5 = vcmp.gt.f32.partialorder %v795_v39, %v754_v28 }
 0x199   : > { %v995_v41 = vsel %vm987_vm4, %v874_v40, %v971_v37  ;;  %v1003_v2 = vsel %vm987_vm4, 3, %v979_v38  ;;  %v948_v44 = vsel %vm940_vm5, %v795_v39, %v754_v28  ;;  %v956_v46 = vsel %vm940_vm5, 1, %v1707_v35 }
 0x19a   : > { %vm1011_vm6 = vcmp.gt.f32.partialorder %v915_v32, %v995_v41 }
 0x19b   : > { %v1019_v42 = vsel %vm1011_vm6, 4, %v1003_v2 }
 0x19c   : > { %v1027_v43 = vpack.c.b16 %v1019_v42, %v1019_v42  ;;  %v918_v4 = vpop.f32.mrf.mxu0 }
 0x19d   : > { %v836_v45 = vpop.f32.mrf.mxu2 }
 0x19e   : > { %v1028_v47 = vpack.c.b8 %v1027_v43, %v1027_v43  ;;  %vm964_vm7 = vcmp.gt.f32.partialorder %v836_v45, %v948_v44 }
 0x19f   : > { %v972_v7 = vsel %vm964_vm7, %v836_v45, %v948_v44  ;;  %v980_v48 = vsel %vm964_vm7, 2, %v956_v46  ;;  %v798_v49 = vpop.f32.mrf.mxu1  ;;  %v877_v3 = vpop.f32.mrf.mxu3 }
 0x1a0   : > { %1043 = vst [vmem:[%s1929_s21] sm:$0x3] %v1028_v47  ;;  %vm988_vm8 = vcmp.gt.f32.partialorder %v877_v3, %v972_v7  ;;  %vm941_vm9 = vcmp.gt.f32.partialorder %v798_v49, %v757_v23 }
 0x1a1   : > { %v996_v50 = vsel %vm988_vm8, %v877_v3, %v972_v7  ;;  %v1004_v11 = vsel %vm988_vm8, 3, %v980_v48  ;;  %v949_v52 = vsel %vm941_vm9, %v798_v49, %v757_v23  ;;  %v957_v54 = vsel %vm941_vm9, 1, %v1707_v35 }
 0x1a2   : > { %vm1012_vm10 = vcmp.gt.f32.partialorder %v918_v4, %v996_v50 }
 0x1a3   : > { %v1020_v51 = vsel %vm1012_vm10, 4, %v1004_v11 }
 0x1a4   : > { %v1029_v5 = vpack.c.b16 %v1020_v51, %v1020_v51  ;;  %v921_v8 = vpop.f32.mrf.mxu0 }
 0x1a5   : > { %v839_v53 = vpop.f32.mrf.mxu2 }
 0x1a6   : > { %v1030_v16 = vpack.c.b8 %v1029_v5, %v1029_v5  ;;  %vm965_vm11 = vcmp.gt.f32.partialorder %v839_v53, %v949_v52 }
 0x1a7   : > { %v973_v55 = vsel %vm965_vm11, %v839_v53, %v949_v52  ;;  %v981_v56 = vsel %vm965_vm11, 2, %v957_v54  ;;  %v801_v57 = vpop.f32.mrf.mxu1  ;;  %v880_v58 = vpop.f32.mrf.mxu3 }
 0x1a8   : > { %1044 = vst [vmem:[%s1929_s21 + $0x2] sm:$0x3] %v1030_v16  ;;  %vm989_vm12 = vcmp.gt.f32.partialorder %v880_v58, %v973_v55  ;;  %vm942_vm13 = vcmp.gt.f32.partialorder %v801_v57, %v2128_v26 }
 0x1a9   : > { %v997_v59 = vsel %vm989_vm12, %v880_v58, %v973_v55  ;;  %v1005_v60 = vsel %vm989_vm12, 3, %v981_v56  ;;  %v950_v0 = vsel %vm942_vm13, %v801_v57, %v2128_v26  ;;  %v958_v6 = vsel %vm942_vm13, 1, %v1707_v35 }
 0x1aa   : > { %vm1013_vm14 = vcmp.gt.f32.partialorder %v921_v8, %v997_v59 }
 0x1ab   : > { %v1021_v61 = vsel %vm1013_vm14, 4, %v1005_v60 }
 0x1ac   : > { %v1031_v62 = vpack.c.b16 %v1021_v61, %v1021_v61  ;;  %v924_v63 = vpop.f32.mrf.mxu0 }
 0x1ad   : > { %v842_v1 = vpop.f32.mrf.mxu2 }
 0x1ae   : > { %v1032_v9 = vpack.c.b8 %v1031_v62, %v1031_v62  ;;  %vm966_vm15 = vcmp.gt.f32.partialorder %v842_v1, %v950_v0 }
 0x1af   : > { %v974_v10 = vsel %vm966_vm15, %v842_v1, %v950_v0  ;;  %v982_v12 = vsel %vm966_vm15, 2, %v958_v6  ;;  %v804_v13 = vpop.f32.mrf.mxu1  ;;  %v883_v14 = vpop.f32.mrf.mxu3 }
 0x1b0   : > { %1045 = vst [vmem:[%s1929_s21 + $0x4] sm:$0x3] %v1032_v9  ;;  %vm990_vm0 = vcmp.gt.f32.partialorder %v883_v14, %v974_v10  ;;  %vm943_vm1 = vcmp.gt.f32.partialorder %v804_v13, %v2126_v25 }
 0x1b1   : > { %v998_v15 = vsel %vm990_vm0, %v883_v14, %v974_v10  ;;  %v1006_v17 = vsel %vm990_vm0, 3, %v982_v12  ;;  %v951_v21 = vsel %vm943_vm1, %v804_v13, %v2126_v25  ;;  %v959_v23 = vsel %vm943_vm1, 1, %v1707_v35 }
 0x1b2   : > { %vm1014_vm2 = vcmp.gt.f32.partialorder %v924_v63, %v998_v15 }
 0x1b3   : > { %v1022_v18 = vsel %vm1014_vm2, 4, %v1006_v17 }
 0x1b4   : > { %v1033_v19 = vpack.c.b16 %v1022_v18, %v1022_v18  ;;  %v927_v20 = vpop.f32.mrf.mxu0 }
 0x1b5   : > { %v845_v22 = vpop.f32.mrf.mxu2 }
 0x1b6   : > { %v1034_v24 = vpack.c.b8 %v1033_v19, %v1033_v19  ;;  %vm967_vm3 = vcmp.gt.f32.partialorder %v845_v22, %v951_v21 }
 0x1b7   : > { %v975_v26 = vsel %vm967_vm3, %v845_v22, %v951_v21  ;;  %v983_v28 = vsel %vm967_vm3, 2, %v959_v23  ;;  %v807_v31 = vpop.f32.mrf.mxu1  ;;  %v886_v32 = vpop.f32.mrf.mxu3 }
 0x1b8   : > { %1046 = vst [vmem:[%s1929_s21 + $0x6] sm:$0x3] %v1034_v24  ;;  %vm991_vm4 = vcmp.gt.f32.partialorder %v886_v32, %v975_v26  ;;  %vm944_vm5 = vcmp.gt.f32.partialorder %v807_v31, %v2132_v29 }
 0x1b9   : > { %v999_v33 = vsel %vm991_vm4, %v886_v32, %v975_v26  ;;  %v1007_v34 = vsel %vm991_vm4, 3, %v983_v28  ;;  %v952_v38 = vsel %vm944_vm5, %v807_v31, %v2132_v29  ;;  %v960_v40 = vsel %vm944_vm5, 1, %v1707_v35 }
 0x1ba   : > { %vm1015_vm6 = vcmp.gt.f32.partialorder %v927_v20, %v999_v33 }
 0x1bb   : > { %v1023_v36 = vsel %vm1015_vm6, 4, %v1007_v34 }
 0x1bc   : > { %v1035_v37 = vpack.c.b16 %v1023_v36, %v1023_v36  ;;  %v930_v25 = vpop.f32.mrf.mxu0 }
 0x1bd   : > { %v848_v39 = vpop.f32.mrf.mxu2 }
 0x1be   : > { %v1036_v41 = vpack.c.b8 %v1035_v37, %v1035_v37  ;;  %vm968_vm7 = vcmp.gt.f32.partialorder %v848_v39, %v952_v38 }
 0x1bf   : > { %v976_v2 = vsel %vm968_vm7, %v848_v39, %v952_v38  ;;  %v984_v42 = vsel %vm968_vm7, 2, %v960_v40  ;;  %v810_v43 = vpop.f32.mrf.mxu1  ;;  %v889_v4 = vpop.f32.mrf.mxu3 }
 0x1c0   : > { %1047 = vst [vmem:[%s1929_s21 + $0x8] sm:$0x3] %v1036_v41  ;;  %vm992_vm8 = vcmp.gt.f32.partialorder %v889_v4, %v976_v2  ;;  %vm945_vm9 = vcmp.gt.f32.partialorder %v810_v43, %v2130_v27 }
 0x1c1   : > { %v1000_v44 = vsel %vm992_vm8, %v889_v4, %v976_v2  ;;  %v1008_v45 = vsel %vm992_vm8, 3, %v984_v42  ;;  %v953_v29 = vsel %vm945_vm9, %v810_v43, %v2130_v27  ;;  %v961_v49 = vsel %vm945_vm9, 1, %v1707_v35 }
 0x1c2   : > { %vm1016_vm10 = vcmp.gt.f32.partialorder %v930_v25, %v1000_v44 }
 0x1c3   : > { %v1024_v46 = vsel %vm1016_vm10, 4, %v1008_v45 }
 0x1c4   : > { %v1037_v47 = vpack.c.b16 %v1024_v46, %v1024_v46  ;;  %v933_v48 = vpop.f32.mrf.mxu0 }
 0x1c5   : > { %v851_v7 = vpop.f32.mrf.mxu2 }
 0x1c6   : > { %v1038_v3 = vpack.c.b8 %v1037_v47, %v1037_v47  ;;  %vm969_vm11 = vcmp.gt.f32.partialorder %v851_v7, %v953_v29 }
 0x1c7   : > { %v977_v50 = vsel %vm969_vm11, %v851_v7, %v953_v29  ;;  %v985_v11 = vsel %vm969_vm11, 2, %v961_v49  ;;  %v813_v51 = vpop.f32.mrf.mxu1  ;;  %v892_v5 = vpop.f32.mrf.mxu3 }
 0x1c8   : > { %1048 = vst [vmem:[%s1929_s21 + $0xa] sm:$0x3] %v1038_v3  ;;  %vm993_vm12 = vcmp.gt.f32.partialorder %v892_v5, %v977_v50  ;;  %vm946_vm13 = vcmp.gt.f32.partialorder %v813_v51, %v2134_v30 }
 0x1c9   : > { %v1001_v8 = vsel %vm993_vm12, %v892_v5, %v977_v50  ;;  %v1009_v52 = vsel %vm993_vm12, 3, %v985_v11  ;;  %v954_v16 = vsel %vm946_vm13, %v813_v51, %v2134_v30  ;;  %v962_v55 = vsel %vm946_vm13, 1, %v1707_v35 }
 0x1ca   : > { %vm1017_vm14 = vcmp.gt.f32.partialorder %v933_v48, %v1001_v8 }
 0x1cb   : > { %v1025_v53 = vsel %vm1017_vm14, 4, %v1009_v52 }
 0x1cc   : > { %v1039_v27 = vpack.c.b16 %v1025_v53, %v1025_v53  ;;  %v936_v60 = vpop.f32.mrf.mxu0 }
 0x1cd   : > { %v854_v54 = vpop.f32.mrf.mxu2 }
 0x1ce   : > { %v1040_v56 = vpack.c.b8 %v1039_v27, %v1039_v27  ;;  %vm970_vm15 = vcmp.gt.f32.partialorder %v854_v54, %v954_v16 }
 0x1cf   : > { %v986_v57 = vsel %vm970_vm15, 2, %v962_v55  ;;  %v895_v58 = vpop.f32.mrf.mxu3  ;;  %v978_v59 = vsel %vm970_vm15, %v854_v54, %v954_v16 }
 0x1d0   : > { %1049 = vst [vmem:[%s1929_s21 + $0xc] sm:$0x3] %v1040_v56  ;;  %vm994_vm0 = vcmp.gt.f32.partialorder %v895_v58, %v978_v59 }
 0x1d1   : > { %v1010_v61 = vsel %vm994_vm0, 3, %v986_v57  ;;  %v1002_v62 = vsel %vm994_vm0, %v895_v58, %v978_v59 }
 0x1d2   : > { %vm1018_vm1 = vcmp.gt.f32.partialorder %v936_v60, %v1002_v62 }
 0x1d3   : > { %v1026_v63 = vsel %vm1018_vm1, 4, %v1010_v61 }
 0x1d4   : > { %v1041_v0 = vpack.c.b16 %v1026_v63, %v1026_v63 }
 0x1d6   : > { %v1042_v1 = vpack.c.b8 %v1041_v0, %v1041_v0 }
 0x1d8   : > { %1050 = vst [vmem:[%s1929_s21 + $0xe] sm:$0x3] %v1042_v1 }
 0x1d9 PF: > { %s23_s28 = sadd.s32 1, %s1700_s28   ;;  %s2226_s9 = smov %s1873_s18 }
 0x1da   : > { %p20_p1 = scmp.ge.s32.totalorder %s23_s28, 6   ;;  %s2227_s10 = sld [smem:[#allocation17_spill]] }
 0x1db   : > { %s2228_s13 = sld [smem:[#allocation18_spill]]  ;;  %s2229_s18 = smov %s1664_s19 }
 0x1dc   : > { %s2230_s19 = smov %s1668_s20  ;;  %s2231_s20 = smov %s2226_s9 }
 0x1dd   : > { %s2232_s21 = smov %s1676_s22  ;;  %s2233_s22 = smov %s1680_s23 }
 0x1de   : > { %s2234_s23 = smov %s1881_s0  ;;  %s2235_s24 = smov %s1692_s26 }
 0x1df   : > { %s2236_s25 = smov %s1696_s27  ;;  %22 = sbr.rel (!%p20_p1) target bundleno = 17 (0x11), region = 114 }
 0x1e0   : > { %s2237_s26 = smov %s2227_s10 }
 0x1e1   : > { %s2238_s27 = smov %s2228_s13 }
 0x1e4   :  { %1081 = vsyncpa [#allocation4], 1 }
 0x1e5   :  { %1083 = vsyncpa [#allocation4 + $0x1], 1 }
 0x1e6   :  { %1084 = vsyncpa [#allocation10], 1 }
 0x1e7   :  { %1086 = vsyncpa [#allocation10 + $0x1], 1 }
 0x1e8   :  { %1087 = vsyncpa [#allocation5], 1 }
 0x1e9   :  { %1089 = vsyncpa [#allocation5 + $0x1], 1 }
 0x1ea   :  { %1090 = vsyncpa [#allocation6], 1 }
 0x1eb   :  { %1092 = vsyncpa [#allocation6 + $0x1], 1 }

</bundles_post_ra>
